<compile_context>
chip_gen: v7x
topology: tpu7x:2x2x1
jax: 0.10.0
libtpu: 0.0.40
codegen_flags: <defaults>
</compile_context>

<pallas_src>
import functools

import jax
import jax.numpy as jnp
from jax.experimental import pallas as pl
from jax.experimental.pallas import tpu as pltpu


def _round_up(x, m):
    return ((x + m - 1) // m) * m


def _round_down(x, m):
    return max(m, (x // m) * m)


def _label_smooth_ce_kernel(logits_ref, targets_ref, partial_ref, *,
                            num_classes: int, epsilon: float,
                            batch: int, block_rows: int):
    # logits_ref: (TN, C) float; targets_ref: (TN, 1) int32; partial_ref: (8, 128) f32
    x = logits_ref[...].astype(jnp.float32)                        # (TN, C)
    tgt = targets_ref[...]                                         # (TN, 1)

    # Row reductions: log-sum-exp, plain sum, and target-logit gather.
    m = jnp.max(x, axis=1, keepdims=True)                          # (TN, 1)
    logz = m + jnp.log(jnp.sum(jnp.exp(x - m), axis=1, keepdims=True))
    sum_x = jnp.sum(x, axis=1, keepdims=True)                      # (TN, 1)
    cls_idx = jax.lax.broadcasted_iota(jnp.int32, x.shape, 1)
    # Out-of-range labels silently give x_t = 0 (labels assumed pre-validated).
    x_t = jnp.sum(jnp.where(cls_idx == tgt, x, 0.0), axis=1, keepdims=True)

    # -sum_c smoothed[c] * log_softmax(x)[c], folded (sum_c smoothed[c] == 1):
    per_row = logz - (1.0 - epsilon) * x_t - (epsilon / num_classes) * sum_x

    # Mask rows past the true batch size BEFORE the cross-row reduction:
    # padded rows hold undefined data and per_row there may be Inf/NaN.
    row0 = pl.program_id(0) * block_rows
    row_idx = row0 + jax.lax.broadcasted_iota(jnp.int32, per_row.shape, 0)
    masked = jnp.where(row_idx < batch, per_row, 0.0)
    partial = jnp.sum(masked)                                      # scalar

    # Lane-dense (8, 128) output block: partial sum at [0, 0], zeros elsewhere.
    rr = jax.lax.broadcasted_iota(jnp.int32, (8, 128), 0)
    cc = jax.lax.broadcasted_iota(jnp.int32, (8, 128), 1)
    partial_ref[...] = jnp.where((rr == 0) & (cc == 0), partial, 0.0)


def cross_entropy_label_smooth(logits, targets, *, num_classes, epsilon=0.1,
                               block_rows=None):
    """logits: (N, C) float array; targets: (N,) int labels. Returns scalar f32."""
    n, c = logits.shape
    assert c == num_classes
    targets2d = targets.astype(jnp.int32).reshape(n, 1)

    itemsize = jnp.dtype(logits.dtype).itemsize
    # Packed-sublane multiple for the input dtype (f32:8, bf16:16, int8/fp8:32).
    sublane = {4: 8, 2: 16, 1: 32}.get(itemsize, 8)

    # Generation-aware scoped-VMEM ceiling: 48 MiB on v7x (64 MiB physical),
    # 64 MiB on v5e/v6e (128 MiB physical); safe fallback 48 MiB.
    try:
        vmem_cap = int(pltpu.get_tpu_info().vmem_capacity_bytes)
    except Exception:  # noqa: BLE001 - conservative fallback off-TPU / old API
        vmem_cap = 64 * 1024 * 1024
    vmem_limit = max(32 * 1024 * 1024,
                     min(vmem_cap - 16 * 1024 * 1024, 64 * 1024 * 1024))

    # VMEM-derived row cap: double-buffered input tile + ~4 f32-tile temps
    # (upcast, exp, gather mask, etc.), with 25% headroom for Mosaic scratch.
    per_row_vmem = 2 * c * itemsize + 4 * c * 4
    rows_vmem_cap = _round_down((vmem_limit * 3 // 4) // per_row_vmem, sublane)

    if block_rows is None:
        # ~4 MiB of logits per tile (dtype-aware): lands on the ~85%+ HBM
        # roofline plateau while amortizing the ~0.35 us/step grid overhead.
        budget_bytes = 4 * 1024 * 1024
        rows_budget = _round_down(budget_bytes // (c * itemsize), sublane)
        # Keep >=4 grid blocks when there is enough data so the "parallel"
        # batch axis shards across both v7x TensorCores.
        min_blocks = 4
        rows_for_min_blocks = max(sublane, _round_up(pl.cdiv(n, min_blocks), sublane))
        block_rows = min(rows_budget, rows_for_min_blocks)
    block_rows = min(int(block_rows), rows_vmem_cap)

    if block_rows >= n:
        block_rows = n                                   # single full block
    else:
        block_rows = _round_down(block_rows, sublane)    # keep tiling happy

    num_blocks = pl.cdiv(n, block_rows)

    kernel = functools.partial(
        _label_smooth_ce_kernel, num_classes=num_classes, epsilon=epsilon,
        batch=n, block_rows=block_rows)

    partials = pl.pallas_call(
        kernel,
        out_shape=jax.ShapeDtypeStruct((num_blocks * 8, 128), jnp.float32),
        grid=(num_blocks,),
        in_specs=[
            pl.BlockSpec((block_rows, c), lambda i: (i, 0)),   # logits tile
            pl.BlockSpec((block_rows, 1), lambda i: (i, 0)),   # targets tile
        ],
        out_specs=pl.BlockSpec((8, 128), lambda i: (i, 0)),    # per-block partial
        compiler_params=pltpu.CompilerParams(
            dimension_semantics=("parallel",),
            vmem_limit_bytes=vmem_limit),
    )(logits, targets2d)

    # Tiny final reduction (num_blocks non-zero entries) + the 1/N scale in XLA.
    return jnp.sum(partials) * (1.0 / n)


if __name__ == "__main__":
    key = jax.random.PRNGKey(0)
    batch, num_classes = 20, 128   # batch not a multiple of block_rows -> exercises masking
    k1, k2 = jax.random.split(key)
    logits = jax.random.normal(k1, (batch, num_classes), dtype=jnp.float32)
    targets = jax.random.randint(k2, (batch,), 0, num_classes, dtype=jnp.int32)

    # Pure-JAX reference (matches the PyTorch module's forward).
    log_probs = jax.nn.log_softmax(logits, axis=1)
    one_hot = jax.nn.one_hot(targets, num_classes, dtype=jnp.float32)
    smoothed = (1.0 - 0.1) * one_hot + 0.1 / num_classes
    ref = jnp.sum(jnp.mean(-smoothed * log_probs, axis=0))

    # Explicit small block_rows: multi-block grid + trailing partial-block masking.
    loss = cross_entropy_label_smooth(
        logits, targets, num_classes=num_classes, epsilon=0.1, block_rows=8)
    loss = jax.block_until_ready(loss)
    assert jnp.allclose(loss, ref, atol=1e-5, rtol=1e-5), (loss, ref)

    # Default (auto) tile-sizing path.
    loss2 = cross_entropy_label_smooth(
        logits, targets, num_classes=num_classes, epsilon=0.1)
    loss2 = jax.block_until_ready(loss2)
    assert jnp.allclose(loss2, ref, atol=1e-5, rtol=1e-5), (loss2, ref)

    print("KERNEL_OK")
</pallas_src>

<mosaic_0001>
module attributes {stable_mosaic.version = 11 : i64} {
  func.func @_label_smooth_ce_kernel(%arg0: i32, %arg1: memref<8x128xf32, #tpu.memory_space<vmem>>, %arg2: memref<8x1xi32, #tpu.memory_space<vmem>>, %arg3: memref<8x128xf32, #tpu.memory_space<vmem>>) attributes {dimension_semantics = [#tpu.dimension_semantics<parallel>], iteration_bounds = array<i64: 3>, scalar_prefetch = 0 : i64, scratch_operands = 0 : i64, tpu.core_type = #tpu.core_type<tc>, window_params = [{transform_indices = @transform_0, window_bounds = array<i64: 8, 128>}, {transform_indices = @transform_1, window_bounds = array<i64: 8, 1>}, {transform_indices = @transform_2, window_bounds = array<i64: 8, 128>}]} {
    %c0 = arith.constant 0 : index
    %c0_0 = arith.constant 0 : index
    %0 = vector.load %arg1[%c0, %c0_0] : memref<8x128xf32, #tpu.memory_space<vmem>>, vector<8x128xf32>
    %c0_1 = arith.constant 0 : index
    %c0_2 = arith.constant 0 : index
    %1 = vector.load %arg2[%c0_1, %c0_2] : memref<8x1xi32, #tpu.memory_space<vmem>>, vector<8x1xi32>
    %cst = arith.constant dense<0xFF800000> : vector<8xf32>
    %2 = vector.multi_reduction <maximumf>, %0, %cst [1] : vector<8x128xf32> to vector<8xf32>
    %3 = vector.shape_cast %2 : vector<8xf32> to vector<8x1xf32>
    %4 = vector.broadcast %3 : vector<8x1xf32> to vector<8x128xf32>
    %5 = arith.subf %0, %4 : vector<8x128xf32>
    %6 = math.exp %5 : vector<8x128xf32>
    %cst_3 = arith.constant dense<0.000000e+00> : vector<8xf32>
    %7 = vector.multi_reduction <add>, %6, %cst_3 [1] : vector<8x128xf32> to vector<8xf32>
    %8 = vector.shape_cast %7 : vector<8xf32> to vector<8x1xf32>
    %9 = math.log %8 : vector<8x1xf32>
    %10 = arith.addf %3, %9 : vector<8x1xf32>
    %cst_4 = arith.constant dense<0.000000e+00> : vector<8xf32>
    %11 = vector.multi_reduction <add>, %0, %cst_4 [1] : vector<8x128xf32> to vector<8xf32>
    %12 = vector.shape_cast %11 : vector<8xf32> to vector<8x1xf32>
    %13 = tpu.iota {dimensions = array<i32: 1>} : vector<8x128xi32>
    %14 = vector.broadcast %1 : vector<8x1xi32> to vector<8x128xi32>
    %15 = arith.cmpi eq, %13, %14 : vector<8x128xi32>
    %cst_5 = arith.constant 0.000000e+00 : f32
    %16 = vector.broadcast %cst_5 : f32 to vector<8x128xf32>
    %17 = arith.select %15, %0, %16 : vector<8x128xi1>, vector<8x128xf32>
    %cst_6 = arith.constant dense<0.000000e+00> : vector<8xf32>
    %18 = vector.multi_reduction <add>, %17, %cst_6 [1] : vector<8x128xf32> to vector<8xf32>
    %19 = vector.shape_cast %18 : vector<8xf32> to vector<8x1xf32>
    %cst_7 = arith.constant 0.899999976 : f32
    %20 = vector.broadcast %cst_7 : f32 to vector<8x1xf32>
    %21 = arith.mulf %20, %19 : vector<8x1xf32>
    %22 = arith.subf %10, %21 : vector<8x1xf32>
    %cst_8 = arith.constant 7.812500e-04 : f32
    %23 = vector.broadcast %cst_8 : f32 to vector<8x1xf32>
    %24 = arith.mulf %23, %12 : vector<8x1xf32>
    %25 = arith.subf %22, %24 : vector<8x1xf32>
    %c8_i32 = arith.constant 8 : i32
    %26 = arith.muli %arg0, %c8_i32 : i32
    %27 = tpu.iota {dimensions = array<i32: 0>} : vector<8x1xi32>
    %28 = vector.broadcast %26 : i32 to vector<8x1xi32>
    %29 = arith.addi %28, %27 : vector<8x1xi32>
    %c20_i32 = arith.constant 20 : i32
    %30 = vector.broadcast %c20_i32 : i32 to vector<8x1xi32>
    %31 = arith.cmpi slt, %29, %30 : vector<8x1xi32>
    %cst_9 = arith.constant 0.000000e+00 : f32
    %32 = vector.broadcast %cst_9 : f32 to vector<8x1xf32>
    %33 = arith.select %31, %25, %32 : vector<8x1xi1>, vector<8x1xf32>
    %34 = vector.shape_cast %33 : vector<8x1xf32> to vector<1x8x1xf32>
    %cst_10 = arith.constant dense<0.000000e+00> : vector<1xf32>
    %35 = vector.multi_reduction <add>, %34, %cst_10 [1, 2] : vector<1x8x1xf32> to vector<1xf32>
    %36 = vector.shape_cast %35 : vector<1xf32> to vector<1x1x1xf32>
    %37 = vector.extract %36[0, 0, 0] : f32 from vector<1x1x1xf32>
    %38 = tpu.iota {dimensions = array<i32: 0>} : vector<8x128xi32>
    %39 = tpu.iota {dimensions = array<i32: 1>} : vector<8x128xi32>
    %c0_i32 = arith.constant 0 : i32
    %40 = vector.broadcast %c0_i32 : i32 to vector<8x128xi32>
    %41 = arith.cmpi eq, %38, %40 : vector<8x128xi32>
    %c0_i32_11 = arith.constant 0 : i32
    %42 = vector.broadcast %c0_i32_11 : i32 to vector<8x128xi32>
    %43 = arith.cmpi eq, %39, %42 : vector<8x128xi32>
    %44 = arith.andi %41, %43 : vector<8x128xi1>
    %cst_12 = arith.constant 0.000000e+00 : f32
    %45 = vector.broadcast %37 : f32 to vector<8x128xf32>
    %46 = vector.broadcast %cst_12 : f32 to vector<8x128xf32>
    %47 = arith.select %44, %45, %46 : vector<8x128xi1>, vector<8x128xf32>
    %c0_13 = arith.constant 0 : index
    %c0_14 = arith.constant 0 : index
    %48 = vector.load %arg3[%c0_13, %c0_14] : memref<8x128xf32, #tpu.memory_space<vmem>>, vector<8x128xf32>
    tpu.vector_store %arg3[%c0_13, %c0_14], %47 {strides = array<i32>} : memref<8x128xf32, #tpu.memory_space<vmem>>, vector<8x128xf32>,
    return
  }
  func.func @transform_0(%arg0: i32) -> (i32, i32) {
    %c0_i32 = arith.constant 0 : i32
    %c0_i32_0 = arith.constant 0 : i32
    return %arg0, %c0_i32 : i32, i32
  }
  func.func @transform_1(%arg0: i32) -> (i32, i32) {
    %c0_i32 = arith.constant 0 : i32
    %c0_i32_0 = arith.constant 0 : i32
    return %arg0, %c0_i32 : i32, i32
  }
  func.func @transform_2(%arg0: i32) -> (i32, i32) {
    %c0_i32 = arith.constant 0 : i32
    %c0_i32_0 = arith.constant 0 : i32
    return %arg0, %c0_i32 : i32, i32
  }
}

</mosaic_0001>

<bundles_post_ra>
// kernel: tpu_custom_call.1
= control target key start
LH: loop header
LB: loop body
LE: loop exit
PB: predicated region body
PF: predicated region fallthrough
CT: control target
= control target key end

     0   :  { %7 = vsyncpa [#allocation3], 0  ;;  %s536_s0 = inlined_call_operand.vmem [shape: f32[20,128], index: 0, kind: input, shape index: {}]   ;;  %s537_s1 = inlined_call_operand.vmem [shape: s32[20,1], index: 1, kind: input, shape index: {}]   ;;  %s538_s2 = inlined_call_operand.hbm [shape: f32[24,128], index: 2, kind: output, shape index: {}]  }
   0x1   :  { %9 = vsyncpa [#allocation3 + $0x1], 0  ;;  %s432_s9 = smov 0   ;;  %s434_s10 = smov 0  }
   0x2   :  { %s436_s11 = smov 0   ;;  %s438_s12 = smov 0  }
   0x3 LB: > { %s453_s13 = sadd.s32 4294967295, %s413_s12   ;;  %s292_s14 = sadd.s32 4294967294, %s413_s12   ;;  %s413_s12 = sphi %s438_s12, %s544_s12   ;;  %s409_s11 = sphi %s436_s11, %s543_s11   ;;  %s405_s10 = sphi %s434_s10, %s542_s10   ;;  %s401_s9 = sphi %s432_s9, %s541_s9  }
   0x4   : > { %s457_s15 = sadd.s32 1, %s413_s12   ;;  %s74_s16 = sadd.s32 1, %s409_s11 }
   0x5   : > { %s71_s17 = ssub.s32 %s413_s12, %s457_s15  ;;  %p84_p0 = scmp.ne.s32.totalorder %s409_s11, %s405_s10 }
   0x6   : > { %p72_p1 = scmp.eq.s32.totalorder %s71_s17, 0  ;;  %p85_p2 = scmp.eq.s32.totalorder %s453_s13, 2 }
   0x7   : > { %p90_p3 = scmp.ne.s32.totalorder %s405_s10, %s401_s9  ;;  %p91_p4 = scmp.eq.s32.totalorder %s292_s14, 2 }
   0x8   : > { %s468_s18 = scalar_select %p72_p1, %s409_s11, %s74_s16  }
   0x9   : > { %p470_p5 = por %p85_p2, %p84_p0  ;;  %p474_p6 = por %p91_p4, %p90_p3 }
   0xa   : > { %p295_p7 = scmp.ge.s32.totalorder %s413_s12, 1  ;;  %p123_p8 = scmp.lt.s32.totalorder %s413_s12, 4 }
   0xc   : > { %p124_p9 = pnand %p295_p7, %p123_p8 }
   0xd   : > { %p148_p10 = scmp.lt.s32.totalorder (!%p124_p9), %s453_s13, 2  ;;  %v415_v0 = vmov (!%p124_p9), 0   ;;  %v170_v6 = vlaneseq (!%p124_p9)  ;;  %s299_s29 = sshll.u32 (!%p124_p9), %s453_s13, 3  ;;  %vm190_vm2 = vcmask (!%p124_p9), 7168  }
   0xe   : > { %127 = sbr.rel (%p124_p9) target bundleno = 566 (0x236), region = 28  ;;  %346 = vset.pattern.permute.xlu0 (!%p124_p9), %v415_v0  ;;  %v186_v14 = vstv (!%p124_p9), %s299_s29  ;;  %s145_s30 = sand.u32 (!%p124_p9), 1, %s405_s10  }
   0xf   : > { %v171_v7 = vand.u32 (!%p124_p9), 127, %v170_v6  ;;  %v185_v13 = vshrl.u32 (!%p124_p9), %v170_v6, 7  ;;  %s296_s3 = sshll.u32 (!%p124_p9), %s145_s30, 3  ;;  %s301_s4 = sshll.u32 (!%p124_p9), %s453_s13, 7 }
  0x10   : > { %s147_s5 = scalar_lea.vmem (!%p124_p9), [#allocation2], %s296_s3  ;;  %s494_s16 = scalar_lea.hbm (!%p124_p9), %s538_s2, %s301_s4 }
  0x11   : > { %v187_v18 = vadd.s32 (!%p124_p9), %v186_v14, %v185_v13  ;;  %vm201_vm3 = vcmp.eq.s32.totalorder (!%p124_p9), %v185_v13, 0  ;;  %vm202_vm4 = vcmp.eq.s32.totalorder (!%p124_p9), %v171_v7, 0  ;;  %s221_s6 = sshll.u32 (!%p124_p9), %s147_s5, 4  ;;  %s208_s17 = scalar_lea.sflag (!%p124_p9), [#allocation3], %s145_s30  ;;  %s496_s6 = int_to_ptr.vmem [resolvable:$true] %s221_s6 }
  0x12   : > { %vm203_vm5 = vmand (!%p124_p9), %vm201_vm3, %vm202_vm4 }
  0x13   : > { %vm188_vm1 = vcmp.lt.s32.totalorder (!%p124_p9), %v187_v18, 20 }
  0x15   : > { %s149_s21 = scalar_select %p148_p10, %s453_s13, 2 }
  0x16   : > { %s416_s13 = smov [#allocation2]  }
  0x17   : > { %s297_s22 = sshll.u32 %s149_s21, 3  ;;  %s351_s21 = scalar_lea.vmem %s496_s6, 128 }
  0x18   : > { %s151_s25 = scalar_lea.vmem %s536_s0, %s297_s22  ;;  %s155_s28 = scalar_lea.vmem %s537_s1, %s297_s22 }
  0x19   : > { %v156_v1 = vld [vmem:[%s151_s25] sm:$0xff]  ;;  %p352_p11 = scmp.ne.s32.totalorder %s496_s6, %s351_s21  ;;  %s355_s22 = sshll.u32 %s416_s13, 4  ;;  %s356_s22 = int_to_ptr.vmem [resolvable:$false] %s355_s22 }
  0x1a   : > { %158 = vmax.xlane.f32.xlu0 %v156_v1  ;;  %v157_v2 = vld [vmem:[%s155_s28] sm:$0xff]  ;;  %s357_s23 = scalar_lea.vmem %s356_s22, 256  ;;  %p358_p0 = scmp.lt.s32.totalorder %s496_s6, %s356_s22 }
  0x1b   : > { %p353_p12 = pnand %p352_p11, %p470_p5  ;;  %p359_p1 = scmp.lt.s32.totalorder %s357_s23, %s351_s21 }
  0x1d   : > { %p354_p13 = pneg %p353_p12  ;;  %p360_p2 = por %p359_p1, %p358_p0 }
  0x1f   : > { %p361_p3 = pnand %p360_p2, %p354_p13 }
  0x30   : > { %173 = vperm.xlu0 %346, %v157_v2  }
  0xa7   : > { %v159_v3 = vpop.xlane.xlu0 %158 }
  0xa8   : > { %v160_v4 = vsub.f32 %v156_v1, %v159_v3 }
  0xaa   : > { %v161_v5 = vmul.f32 1.442695, %v160_v4 }
  0xac   : > { %347 = vpow2.f32 %v161_v5 }
  0xaf   : > { %v174_v8 = vpop.permute.xlu0 %173 }
  0xb0   : > { %vm175_vm0 = vcmp.eq.s32.totalorder %v171_v7, %v174_v8 }
  0xb1   : > { %v176_v10 = vsel %vm175_vm0, %v156_v1, 0.0 }
  0xb6   : > { %v348_v9 = vpop.eup %347 }
  0xb7   : > { %163 = vadd.xlane.f32.xlu1 %v348_v9 }
  0xbb   : > { %177 = vadd.xlane.f32.xlu1 %v176_v10 }
  0xbf   : > { %168 = vadd.xlane.f32.xlu1 %v156_v1 }
 0x144   : > { %v164_v11 = vpop.xlane.xlu1 %163 }
 0x145   : > { %349 = vlog2.f32 %v164_v11 }
 0x148   : > { %v178_v12 = vpop.xlane.xlu1 %177 }
 0x149   : > { %v179_v20 = vmul.f32 0.9, %v178_v12 }
 0x14c   : > { %v169_v16 = vpop.xlane.xlu1 %168 }
 0x14d   : > { %v181_v21 = vmul.f32 0.00078125, %v169_v16 }
 0x14f   : > { %v350_v15 = vpop.eup %349 }
 0x150   : > { %v166_v17 = vmul.f32 0.6931472, %v350_v15 }
 0x152   : > { %v167_v19 = vadd.f32 %v166_v17, %v159_v3 }
 0x154   : > { %v180_v22 = vsub.f32 %v167_v19, %v179_v20 }
 0x156   : > { %v182_v23 = vsub.f32 %v180_v22, %v181_v21 }
 0x158   : > { %v189_v24 = vsel %vm188_vm1, %v182_v23, 0.0 }
 0x159   : > { %v191_v25 = vsel %vm190_vm2, %v189_v24, 0.0 }
 0x15a   : > { %192 = vadd.xlane.f32.xlu1 %v191_v25 }
 0x1e7   : > { %v193_v26 = vpop.xlane.xlu1 %192 }
 0x1e8   : > { %v194_v27 = vrot.slane %v193_v26, 4 }
 0x1ea   : > { %v195_v28 = vadd.f32 %v194_v27, %v193_v26 }
 0x1ec   : > { %v196_v29 = vrot.slane %v195_v28, 2 }
 0x1ee   : > { %v197_v30 = vadd.f32 %v196_v29, %v195_v28 }
 0x1f0   : > { %v198_v31 = vrot.slane %v197_v30, 1 }
 0x1f2   : > { %v199_v32 = vadd.f32 %v198_v31, %v197_v30 }
 0x1f4   : > { %304 = vpush %v199_v32 }
 0x225   : > { %s305_s7 = spop %304 }
 0x226   : > { %v204_v33 = vstv %s305_s7 }
 0x227   : > { %v205_v34 = vsel %vm203_vm5, %v204_v33, 0.0 }
 0x228   : > { %206 = vst [vmem:[%s147_s5] sm:$0xff] %v205_v34 }
 0x229   : > { %364 = shalt.err (!%p361_p3)
}
 0x22a   : > { %s365_s24 = scalar_lea.hbm %s494_s16, 128  ;;  %s369_s27 = scalar_lea.hbm %s538_s2, 384 }
 0x22b   : > { %p366_p4 = scmp.ne.s32.totalorder %s494_s16, %s365_s24  ;;  %p370_p9 = scmp.lt.u32.totalorder %s494_s16, %s538_s2 }
 0x22c   : > { %p371_p10 = scmp.lt.u32.totalorder %s369_s27, %s365_s24  ;;  %p373_p12 = scmp.lt.u32.totalorder %s365_s24, %s494_s16 }
 0x22d   : > { %p367_p7 = pnand %p366_p4, %p470_p5 }
 0x22e   : > { %p372_p11 = por %p371_p10, %p370_p9 }
 0x22f   : > { %p368_p8 = pneg %p367_p7 }
 0x230   : > { %p374_p13 = por %p373_p12, %p372_p11 }
 0x232   : > { %p375_p0 = pnand %p374_p13, %p368_p8 }
 0x234   : > { %378 = shalt.err (!%p375_p0)
}
 0x235   : > { %306 = dma.vmem_to_hbm [thread:$0]  (%p470_p5), %s496_s6, 128, %s494_s16, %s208_s17  }
 0x236 PF: > { %p312_p1 = scmp.ge.s32.totalorder %s413_s12, 2  ;;  %s233_s30 = sand.u32 1, %s401_s9  }
 0x237   : > { %s234_s3 = scalar_lea.sflag [#allocation3], %s233_s30 }
 0x238   : > { %p309_p2 = pnand %p312_p1, %p474_p6 }
 0x23a   : > { %396 = dma.done.wait (!%p309_p2), %s234_s3, 128  }
 0x23b   : > { %398 = vsyncadd (!%p309_p2), %s234_s3, 4294967168  ;;  %p12_p3 = scmp.ge.s32.totalorder %s457_s15, 5   ;;  %s541_s9 = smov %s405_s10 }
 0x23c   : > { %s542_s10 = smov %s409_s11  ;;  %s543_s11 = smov %s468_s18 }
 0x23d   : > { %s544_s12 = smov %s457_s15  ;;  %14 = sbr.rel (!%p12_p3) target bundleno = 3 (0x3), region = 66 }
 0x244   :  { %239 = vsyncpa [#allocation3], 1 }
 0x245   :  { %241 = vsyncpa [#allocation3 + $0x1], 1 }

</bundles_post_ra>
